<compile_context>
chip_gen: v5e
topology: v5e:2x2
jax: 0.10.0
libtpu: 0.0.40
codegen_flags: <defaults>
</compile_context>

<pallas_src>
import functools

import jax
import jax.numpy as jnp
from jax import lax
from jax.experimental import pallas as pl
from jax.experimental.pallas import tpu as pltpu


_FAST_PATH_MAX_TABLE_BYTES = 24 * 1024 * 1024   # table kept resident in VMEM below this
_DMA_SEM_POOL = 8                               # fixed DMA semaphore pool (HBM fallback)


def _round_up(x, m):
    return ((x + m - 1) // m) * m


# -----------------------------------------------------------------------------------------
# Fast path: table resident in VMEM, in-VMEM row gather, lane-packed output.
# -----------------------------------------------------------------------------------------
def _gather_table_resident_kernel(ids_ref, table_ref, out_ref, *, pack, dim):
    """ids_ref  : SMEM (N_pad,) int32  -- scalar-prefetched, pre-wrapped/clamped ids
    table_ref: VMEM (C, dim)         -- full table, resident across all grid steps
    out_ref  : VMEM (G//pack, pack*dim) -- lane-dense pipelined output block
    """
    packed_rows = out_ref.shape[0]
    base = pl.program_id(0) * (packed_rows * pack)

    def body(r, carry):
        # `pack` gathered rows share one 128-lane output row; lane offsets p*dim are static,
        # only the sublane offsets (r, rid) are dynamic.
        for p in range(pack):
            rid = ids_ref[base + r * pack + p]
            out_ref[pl.ds(r, 1), pl.ds(p * dim, dim)] = table_ref[pl.ds(rid, 1), :]
        return carry

    # Bounded unroll keeps the scalar/load/store slots fed without exploding code size.
    lax.fori_loop(0, packed_rows, body, 0, unroll=8)


def _gather_table_resident(ids, table, G, num_tiles, N_pad, pack):
    C, D = table.shape
    itemsize = jnp.dtype(table.dtype).itemsize
    packed_G = G // pack
    out_cols = pack * D
    packed_rows_total = N_pad // pack

    table_bytes = C * D * itemsize
    out_block_bytes = packed_G * out_cols * itemsize
    # Resident table + double-buffered out block + slack. Only raise the scoped VMEM limit
    # when we actually need more than v5e's 16 MiB default.
    vmem_needed = table_bytes + 2 * out_block_bytes + (2 << 20)
    vmem_limit = int(vmem_needed) if vmem_needed > (16 << 20) else None

    grid_spec = pltpu.PrefetchScalarGridSpec(
        num_scalar_prefetch=1,                       # ids -> SMEM, drive in-kernel addresses
        grid=(num_tiles,),
        in_specs=[
            # Full-array block; index (0,0) every step -> DMA'd in once, stays resident.
            pl.BlockSpec((C, D), lambda g, ids: (0, 0)),
        ],
        out_specs=pl.BlockSpec((packed_G, out_cols), lambda g, ids: (g, 0)),
    )

    out_packed = pl.pallas_call(
        functools.partial(_gather_table_resident_kernel, pack=pack, dim=D),
        out_shape=jax.ShapeDtypeStruct((packed_rows_total, out_cols), table.dtype),
        grid_spec=grid_spec,
        compiler_params=pltpu.CompilerParams(
            # Rows are independent. "parallel" is a no-op on v5e/v6e.
            # TODO(synk): on v7x try pltpu.CORE_PARALLEL (or pl.core_map) to shard the row
            # axis over both TensorCores.
            dimension_semantics=("parallel",),
            vmem_limit_bytes=vmem_limit,
        ),
        cost_estimate=pl.CostEstimate(
            flops=0,
            transcendentals=0,
            bytes_accessed=table_bytes + 2 * N_pad * D * itemsize + N_pad * 4,
        ),
    )(ids, table)

    # (N_pad/pack, pack*D) -> (N_pad, D): pure row-major reshape, no transpose / no copy
    # semantics change.
    return out_packed.reshape(N_pad, D)


# -----------------------------------------------------------------------------------------
# Fallback: table too big for VMEM -> true HBM DMA row gather with a fixed semaphore pool.
# -----------------------------------------------------------------------------------------
def _gather_hbm_kernel(ids_ref, table_hbm, out_ref, sems, *, pool):
    """ids_ref  : SMEM (N_pad,) int32
    table_hbm: HBM (C, D) raw ref (memory_space=pl.ANY) -- never fully read
    out_ref  : VMEM (G, D) pipelined output block
    sems     : DMA semaphores (pool,)  -- fixed pool, round-robined per chunk
    """
    G = out_ref.shape[0]
    base = pl.program_id(0) * G
    num_chunks = G // pool

    def chunk(c, carry):
        # Issue `pool` row-gather DMAs concurrently, then wait the chunk.
        copies = []
        for p in range(pool):                          # small static unroll (pool=8)
            j = c * pool + p
            rid = ids_ref[base + j]
            cp = pltpu.make_async_copy(
                table_hbm.at[pl.ds(rid, 1), :],        # (1, D) row in HBM
                out_ref.at[pl.ds(j, 1), :],            # (1, D) row of the VMEM out block
                sems.at[p],
            )
            cp.start()
            copies.append(cp)
        for cp in copies:
            cp.wait()
        return carry

    lax.fori_loop(0, num_chunks, chunk, 0)


def _gather_hbm_dma(ids, table, G, num_tiles, N_pad):
    C, D = table.shape
    itemsize = jnp.dtype(table.dtype).itemsize

    grid_spec = pltpu.PrefetchScalarGridSpec(
        num_scalar_prefetch=1,
        grid=(num_tiles,),
        in_specs=[pl.BlockSpec(memory_space=pl.ANY)],   # table stays in HBM; manual DMA only
        out_specs=pl.BlockSpec((G, D), lambda g, ids: (g, 0)),
        scratch_shapes=[pltpu.SemaphoreType.DMA((_DMA_SEM_POOL,))],
    )

    return pl.pallas_call(
        functools.partial(_gather_hbm_kernel, pool=_DMA_SEM_POOL),
        out_shape=jax.ShapeDtypeStruct((N_pad, D), table.dtype),
        grid_spec=grid_spec,
        compiler_params=pltpu.CompilerParams(dimension_semantics=("parallel",)),
        cost_estimate=pl.CostEstimate(
            flops=0,
            transcendentals=0,
            bytes_accessed=2 * N_pad * D * itemsize + N_pad * 4,
        ),
    )(ids, table)


# -----------------------------------------------------------------------------------------
# Wrapper
# -----------------------------------------------------------------------------------------
def feature_embedding_pallas(x, table, rows_per_tile=512, force_hbm_gather=False):
    """x: (B, F) int ids; table: (C, D) -> (B, F, D) gather.

    rows_per_tile: flattened (B*F) rows gathered per grid step. 512 amortizes the ~0.35us
    per-step fixed overhead; the double-buffered, lane-packed out block is then only
    2 * (512/pack) * 128 * 4 B = 128 KiB (D=32), far below VMEM on every chip.
    """
    B, F = x.shape
    C, D = table.shape
    N = B * F
    itemsize = jnp.dtype(table.dtype).itemsize
    table_bytes = C * D * itemsize

    # Lane packing: with D < 128 (and 128 % D == 0), pack 128//D gathered rows per
    # 128-lane output row so writeback stores/DMAs are lane-dense.
    pack = (128 // D) if (D < 128 and 128 % D == 0) else 1
    row_align = 8 * pack

    if N <= rows_per_tile:
        G = _round_up(max(N, row_align), row_align)
    else:
        G = _round_up(rows_per_tile, row_align)
    num_tiles = (N + G - 1) // G
    N_pad = num_tiles * G

    ids = x.reshape(N).astype(jnp.int32)
    # Hoisted out of the kernel: one vectorized wrap+clamp matching jnp `table[x]`
    # semantics for ids in [-C, C) (torch would raise on OOB ids; we clamp like jnp).
    ids = jnp.where(ids < 0, ids + C, ids)
    ids = jnp.clip(ids, 0, C - 1)
    if N_pad != N:
        # TODO(synk): tail pad rows gather row 0 and are sliced away; they could be skipped
        # with @pl.when guards, but the waste is bounded by one tile of (1, D) rows.
        ids = jnp.pad(ids, (0, N_pad - N))

    # TODO(synk): for very large B*F (> ~256K ids) switch the scalar-prefetched id vector
    # (1-D SMEM pads to next_pow2(4N) bytes) to a per-tile SMEM BlockSpec.

    if table_bytes <= _FAST_PATH_MAX_TABLE_BYTES and not force_hbm_gather:
        out_flat = _gather_table_resident(ids, table, G, num_tiles, N_pad, pack)
    else:
        out_flat = _gather_hbm_dma(ids, table, G, num_tiles, N_pad)

    return out_flat[:N].reshape(B, F, D)


class BasicModelPallas:
    """JAX/Pallas port of the PyTorch BasicModel."""

    def __init__(self, opt, key):
        self.latent_dim = opt["latent_dim"]
        self.feature_num = opt["feat_num"]
        self.field_num = opt["field_num"]
        # Deterministic "FeatureEmbedding" parameter init (synthetic, not a checkpoint).
        self.embedding_table = (
            jax.random.normal(key, (self.feature_num, self.latent_dim), dtype=jnp.float32)
            * 0.01
        )

    def forward(self, x):
        # Base class forward is `pass`; expose the embedding lookup the module sets up.
        return feature_embedding_pallas(x, self.embedding_table)

    def reg(self):
        return 0.0


if __name__ == "__main__":
    opt = {"latent_dim": 32, "feat_num": 64, "field_num": 8}
    batch = 2

    key = jax.random.PRNGKey(0)
    k_table, k_idx = jax.random.split(key)

    model = BasicModelPallas(opt, k_table)

    # x: (batch, field_num) integer feature ids in [0, feat_num)
    x = jax.random.randint(
        k_idx, (batch, opt["field_num"]), 0, opt["feat_num"], dtype=jnp.int32
    )

    ref = model.embedding_table[x]                       # (B, F, D) reference gather

    # Fast path (table resident in VMEM) -- the path real small/medium tables take.
    out = jax.block_until_ready(model.forward(x))
    assert out.shape == (batch, opt["field_num"], opt["latent_dim"])
    assert bool(jnp.array_equal(out, ref)), "fast path mismatch vs reference gather"

    # Also exercise the large-table HBM DMA-gather fallback on the same inputs.
    out_dma = jax.block_until_ready(
        feature_embedding_pallas(x, model.embedding_table, force_hbm_gather=True)
    )
    assert bool(jnp.array_equal(out_dma, ref)), "HBM DMA path mismatch vs reference gather"

    print("KERNEL_OK")
</pallas_src>

<mosaic_0001>
module attributes {stable_mosaic.version = 11 : i64} {
  func.func @_gather_table_resident_kernel(%arg0: i32, %arg1: memref<32xi32, #tpu.memory_space<smem>>, %arg2: memref<64x32xf32, #tpu.memory_space<vmem>>, %arg3: memref<8x128xf32, #tpu.memory_space<vmem>>) attributes {dimension_semantics = [#tpu.dimension_semantics<parallel>], iteration_bounds = array<i64: 1>, scalar_prefetch = 1 : i64, scratch_operands = 0 : i64, tpu.core_type = #tpu.core_type<tc>, window_params = [{pipeline_mode = #tpu.pipeline_mode<synchronous>, transform_indices = @transform_0, window_bounds = array<i64: 64, 32>}, {transform_indices = @transform_1, window_bounds = array<i64: 8, 128>}]} {
    %c32_i32 = arith.constant 32 : i32
    %0 = arith.muli %arg0, %c32_i32 : i32
    %c0_i32 = arith.constant 0 : i32
    %c4_i32 = arith.constant 4 : i32
    %1 = arith.muli %c0_i32, %c4_i32 : i32
    %2 = arith.addi %0, %1 : i32
    %c0_i32_0 = arith.constant 0 : i32
    %3 = arith.addi %2, %c0_i32_0 : i32
    %4 = arith.index_cast %3 : i32 to index
    %5 = memref.load %arg1[%4] : memref<32xi32, #tpu.memory_space<smem>>
    %6 = arith.index_cast %5 : i32 to index
    %c0 = arith.constant 0 : index
    %7 = vector.load %arg2[%6, %c0] : memref<64x32xf32, #tpu.memory_space<vmem>>, vector<1x32xf32>
    %8 = arith.index_cast %c0_i32 : i32 to index
    %c0_1 = arith.constant 0 : index
    %9 = vector.load %arg3[%8, %c0_1] : memref<8x128xf32, #tpu.memory_space<vmem>>, vector<1x32xf32>
    tpu.vector_store %arg3[%8, %c0_1], %7 {strides = array<i32>} : memref<8x128xf32, #tpu.memory_space<vmem>>, vector<1x32xf32>,
    %c4_i32_2 = arith.constant 4 : i32
    %10 = arith.muli %c0_i32, %c4_i32_2 : i32
    %11 = arith.addi %0, %10 : i32
    %c1_i32 = arith.constant 1 : i32
    %12 = arith.addi %11, %c1_i32 : i32
    %13 = arith.index_cast %12 : i32 to index
    %14 = memref.load %arg1[%13] : memref<32xi32, #tpu.memory_space<smem>>
    %15 = arith.index_cast %14 : i32 to index
    %c0_3 = arith.constant 0 : index
    %16 = vector.load %arg2[%15, %c0_3] : memref<64x32xf32, #tpu.memory_space<vmem>>, vector<1x32xf32>
    %17 = arith.index_cast %c0_i32 : i32 to index
    %c32 = arith.constant 32 : index
    %18 = vector.load %arg3[%17, %c32] : memref<8x128xf32, #tpu.memory_space<vmem>>, vector<1x32xf32>
    tpu.vector_store %arg3[%17, %c32], %16 {strides = array<i32>} : memref<8x128xf32, #tpu.memory_space<vmem>>, vector<1x32xf32>,
    %c4_i32_4 = arith.constant 4 : i32
    %19 = arith.muli %c0_i32, %c4_i32_4 : i32
    %20 = arith.addi %0, %19 : i32
    %c2_i32 = arith.constant 2 : i32
    %21 = arith.addi %20, %c2_i32 : i32
    %22 = arith.index_cast %21 : i32 to index
    %23 = memref.load %arg1[%22] : memref<32xi32, #tpu.memory_space<smem>>
    %24 = arith.index_cast %23 : i32 to index
    %c0_5 = arith.constant 0 : index
    %25 = vector.load %arg2[%24, %c0_5] : memref<64x32xf32, #tpu.memory_space<vmem>>, vector<1x32xf32>
    %26 = arith.index_cast %c0_i32 : i32 to index
    %c64 = arith.constant 64 : index
    %27 = vector.load %arg3[%26, %c64] : memref<8x128xf32, #tpu.memory_space<vmem>>, vector<1x32xf32>
    tpu.vector_store %arg3[%26, %c64], %25 {strides = array<i32>} : memref<8x128xf32, #tpu.memory_space<vmem>>, vector<1x32xf32>,
    %c4_i32_6 = arith.constant 4 : i32
    %28 = arith.muli %c0_i32, %c4_i32_6 : i32
    %29 = arith.addi %0, %28 : i32
    %c3_i32 = arith.constant 3 : i32
    %30 = arith.addi %29, %c3_i32 : i32
    %31 = arith.index_cast %30 : i32 to index
    %32 = memref.load %arg1[%31] : memref<32xi32, #tpu.memory_space<smem>>
    %33 = arith.index_cast %32 : i32 to index
    %c0_7 = arith.constant 0 : index
    %34 = vector.load %arg2[%33, %c0_7] : memref<64x32xf32, #tpu.memory_space<vmem>>, vector<1x32xf32>
    %35 = arith.index_cast %c0_i32 : i32 to index
    %c96 = arith.constant 96 : index
    %36 = vector.load %arg3[%35, %c96] : memref<8x128xf32, #tpu.memory_space<vmem>>, vector<1x32xf32>
    tpu.vector_store %arg3[%35, %c96], %34 {strides = array<i32>} : memref<8x128xf32, #tpu.memory_space<vmem>>, vector<1x32xf32>,
    %c1_i32_8 = arith.constant 1 : i32
    %c4_i32_9 = arith.constant 4 : i32
    %37 = arith.muli %c1_i32_8, %c4_i32_9 : i32
    %38 = arith.addi %0, %37 : i32
    %c0_i32_10 = arith.constant 0 : i32
    %39 = arith.addi %38, %c0_i32_10 : i32
    %40 = arith.index_cast %39 : i32 to index
    %41 = memref.load %arg1[%40] : memref<32xi32, #tpu.memory_space<smem>>
    %42 = arith.index_cast %41 : i32 to index
    %c0_11 = arith.constant 0 : index
    %43 = vector.load %arg2[%42, %c0_11] : memref<64x32xf32, #tpu.memory_space<vmem>>, vector<1x32xf32>
    %44 = arith.index_cast %c1_i32_8 : i32 to index
    %c0_12 = arith.constant 0 : index
    %45 = vector.load %arg3[%44, %c0_12] : memref<8x128xf32, #tpu.memory_space<vmem>>, vector<1x32xf32>
    tpu.vector_store %arg3[%44, %c0_12], %43 {strides = array<i32>} : memref<8x128xf32, #tpu.memory_space<vmem>>, vector<1x32xf32>,
    %c4_i32_13 = arith.constant 4 : i32
    %46 = arith.muli %c1_i32_8, %c4_i32_13 : i32
    %47 = arith.addi %0, %46 : i32
    %c1_i32_14 = arith.constant 1 : i32
    %48 = arith.addi %47, %c1_i32_14 : i32
    %49 = arith.index_cast %48 : i32 to index
    %50 = memref.load %arg1[%49] : memref<32xi32, #tpu.memory_space<smem>>
    %51 = arith.index_cast %50 : i32 to index
    %c0_15 = arith.constant 0 : index
    %52 = vector.load %arg2[%51, %c0_15] : memref<64x32xf32, #tpu.memory_space<vmem>>, vector<1x32xf32>
    %53 = arith.index_cast %c1_i32_8 : i32 to index
    %c32_16 = arith.constant 32 : index
    %54 = vector.load %arg3[%53, %c32_16] : memref<8x128xf32, #tpu.memory_space<vmem>>, vector<1x32xf32>
    tpu.vector_store %arg3[%53, %c32_16], %52 {strides = array<i32>} : memref<8x128xf32, #tpu.memory_space<vmem>>, vector<1x32xf32>,
    %c4_i32_17 = arith.constant 4 : i32
    %55 = arith.muli %c1_i32_8, %c4_i32_17 : i32
    %56 = arith.addi %0, %55 : i32
    %c2_i32_18 = arith.constant 2 : i32
    %57 = arith.addi %56, %c2_i32_18 : i32
    %58 = arith.index_cast %57 : i32 to index
    %59 = memref.load %arg1[%58] : memref<32xi32, #tpu.memory_space<smem>>
    %60 = arith.index_cast %59 : i32 to index
    %c0_19 = arith.constant 0 : index
    %61 = vector.load %arg2[%60, %c0_19] : memref<64x32xf32, #tpu.memory_space<vmem>>, vector<1x32xf32>
    %62 = arith.index_cast %c1_i32_8 : i32 to index
    %c64_20 = arith.constant 64 : index
    %63 = vector.load %arg3[%62, %c64_20] : memref<8x128xf32, #tpu.memory_space<vmem>>, vector<1x32xf32>
    tpu.vector_store %arg3[%62, %c64_20], %61 {strides = array<i32>} : memref<8x128xf32, #tpu.memory_space<vmem>>, vector<1x32xf32>,
    %c4_i32_21 = arith.constant 4 : i32
    %64 = arith.muli %c1_i32_8, %c4_i32_21 : i32
    %65 = arith.addi %0, %64 : i32
    %c3_i32_22 = arith.constant 3 : i32
    %66 = arith.addi %65, %c3_i32_22 : i32
    %67 = arith.index_cast %66 : i32 to index
    %68 = memref.load %arg1[%67] : memref<32xi32, #tpu.memory_space<smem>>
    %69 = arith.index_cast %68 : i32 to index
    %c0_23 = arith.constant 0 : index
    %70 = vector.load %arg2[%69, %c0_23] : memref<64x32xf32, #tpu.memory_space<vmem>>, vector<1x32xf32>
    %71 = arith.index_cast %c1_i32_8 : i32 to index
    %c96_24 = arith.constant 96 : index
    %72 = vector.load %arg3[%71, %c96_24] : memref<8x128xf32, #tpu.memory_space<vmem>>, vector<1x32xf32>
    tpu.vector_store %arg3[%71, %c96_24], %70 {strides = array<i32>} : memref<8x128xf32, #tpu.memory_space<vmem>>, vector<1x32xf32>,
    %c2_i32_25 = arith.constant 2 : i32
    %c4_i32_26 = arith.constant 4 : i32
    %73 = arith.muli %c2_i32_25, %c4_i32_26 : i32
    %74 = arith.addi %0, %73 : i32
    %c0_i32_27 = arith.constant 0 : i32
    %75 = arith.addi %74, %c0_i32_27 : i32
    %76 = arith.index_cast %75 : i32 to index
    %77 = memref.load %arg1[%76] : memref<32xi32, #tpu.memory_space<smem>>
    %78 = arith.index_cast %77 : i32 to index
    %c0_28 = arith.constant 0 : index
    %79 = vector.load %arg2[%78, %c0_28] : memref<64x32xf32, #tpu.memory_space<vmem>>, vector<1x32xf32>
    %80 = arith.index_cast %c2_i32_25 : i32 to index
    %c0_29 = arith.constant 0 : index
    %81 = vector.load %arg3[%80, %c0_29] : memref<8x128xf32, #tpu.memory_space<vmem>>, vector<1x32xf32>
    tpu.vector_store %arg3[%80, %c0_29], %79 {strides = array<i32>} : memref<8x128xf32, #tpu.memory_space<vmem>>, vector<1x32xf32>,
    %c4_i32_30 = arith.constant 4 : i32
    %82 = arith.muli %c2_i32_25, %c4_i32_30 : i32
    %83 = arith.addi %0, %82 : i32
    %c1_i32_31 = arith.constant 1 : i32
    %84 = arith.addi %83, %c1_i32_31 : i32
    %85 = arith.index_cast %84 : i32 to index
    %86 = memref.load %arg1[%85] : memref<32xi32, #tpu.memory_space<smem>>
    %87 = arith.index_cast %86 : i32 to index
    %c0_32 = arith.constant 0 : index
    %88 = vector.load %arg2[%87, %c0_32] : memref<64x32xf32, #tpu.memory_space<vmem>>, vector<1x32xf32>
    %89 = arith.index_cast %c2_i32_25 : i32 to index
    %c32_33 = arith.constant 32 : index
    %90 = vector.load %arg3[%89, %c32_33] : memref<8x128xf32, #tpu.memory_space<vmem>>, vector<1x32xf32>
    tpu.vector_store %arg3[%89, %c32_33], %88 {strides = array<i32>} : memref<8x128xf32, #tpu.memory_space<vmem>>, vector<1x32xf32>,
    %c4_i32_34 = arith.constant 4 : i32
    %91 = arith.muli %c2_i32_25, %c4_i32_34 : i32
    %92 = arith.addi %0, %91 : i32
    %c2_i32_35 = arith.constant 2 : i32
    %93 = arith.addi %92, %c2_i32_35 : i32
    %94 = arith.index_cast %93 : i32 to index
    %95 = memref.load %arg1[%94] : memref<32xi32, #tpu.memory_space<smem>>
    %96 = arith.index_cast %95 : i32 to index
    %c0_36 = arith.constant 0 : index
    %97 = vector.load %arg2[%96, %c0_36] : memref<64x32xf32, #tpu.memory_space<vmem>>, vector<1x32xf32>
    %98 = arith.index_cast %c2_i32_25 : i32 to index
    %c64_37 = arith.constant 64 : index
    %99 = vector.load %arg3[%98, %c64_37] : memref<8x128xf32, #tpu.memory_space<vmem>>, vector<1x32xf32>
    tpu.vector_store %arg3[%98, %c64_37], %97 {strides = array<i32>} : memref<8x128xf32, #tpu.memory_space<vmem>>, vector<1x32xf32>,
    %c4_i32_38 = arith.constant 4 : i32
    %100 = arith.muli %c2_i32_25, %c4_i32_38 : i32
    %101 = arith.addi %0, %100 : i32
    %c3_i32_39 = arith.constant 3 : i32
    %102 = arith.addi %101, %c3_i32_39 : i32
    %103 = arith.index_cast %102 : i32 to index
    %104 = memref.load %arg1[%103] : memref<32xi32, #tpu.memory_space<smem>>
    %105 = arith.index_cast %104 : i32 to index
    %c0_40 = arith.constant 0 : index
    %106 = vector.load %arg2[%105, %c0_40] : memref<64x32xf32, #tpu.memory_space<vmem>>, vector<1x32xf32>
    %107 = arith.index_cast %c2_i32_25 : i32 to index
    %c96_41 = arith.constant 96 : index
    %108 = vector.load %arg3[%107, %c96_41] : memref<8x128xf32, #tpu.memory_space<vmem>>, vector<1x32xf32>
    tpu.vector_store %arg3[%107, %c96_41], %106 {strides = array<i32>} : memref<8x128xf32, #tpu.memory_space<vmem>>, vector<1x32xf32>,
    %c3_i32_42 = arith.constant 3 : i32
    %c4_i32_43 = arith.constant 4 : i32
    %109 = arith.muli %c3_i32_42, %c4_i32_43 : i32
    %110 = arith.addi %0, %109 : i32
    %c0_i32_44 = arith.constant 0 : i32
    %111 = arith.addi %110, %c0_i32_44 : i32
    %112 = arith.index_cast %111 : i32 to index
    %113 = memref.load %arg1[%112] : memref<32xi32, #tpu.memory_space<smem>>
    %114 = arith.index_cast %113 : i32 to index
    %c0_45 = arith.constant 0 : index
    %115 = vector.load %arg2[%114, %c0_45] : memref<64x32xf32, #tpu.memory_space<vmem>>, vector<1x32xf32>
    %116 = arith.index_cast %c3_i32_42 : i32 to index
    %c0_46 = arith.constant 0 : index
    %117 = vector.load %arg3[%116, %c0_46] : memref<8x128xf32, #tpu.memory_space<vmem>>, vector<1x32xf32>
    tpu.vector_store %arg3[%116, %c0_46], %115 {strides = array<i32>} : memref<8x128xf32, #tpu.memory_space<vmem>>, vector<1x32xf32>,
    %c4_i32_47 = arith.constant 4 : i32
    %118 = arith.muli %c3_i32_42, %c4_i32_47 : i32
    %119 = arith.addi %0, %118 : i32
    %c1_i32_48 = arith.constant 1 : i32
    %120 = arith.addi %119, %c1_i32_48 : i32
    %121 = arith.index_cast %120 : i32 to index
    %122 = memref.load %arg1[%121] : memref<32xi32, #tpu.memory_space<smem>>
    %123 = arith.index_cast %122 : i32 to index
    %c0_49 = arith.constant 0 : index
    %124 = vector.load %arg2[%123, %c0_49] : memref<64x32xf32, #tpu.memory_space<vmem>>, vector<1x32xf32>
    %125 = arith.index_cast %c3_i32_42 : i32 to index
    %c32_50 = arith.constant 32 : index
    %126 = vector.load %arg3[%125, %c32_50] : memref<8x128xf32, #tpu.memory_space<vmem>>, vector<1x32xf32>
    tpu.vector_store %arg3[%125, %c32_50], %124 {strides = array<i32>} : memref<8x128xf32, #tpu.memory_space<vmem>>, vector<1x32xf32>,
    %c4_i32_51 = arith.constant 4 : i32
    %127 = arith.muli %c3_i32_42, %c4_i32_51 : i32
    %128 = arith.addi %0, %127 : i32
    %c2_i32_52 = arith.constant 2 : i32
    %129 = arith.addi %128, %c2_i32_52 : i32
    %130 = arith.index_cast %129 : i32 to index
    %131 = memref.load %arg1[%130] : memref<32xi32, #tpu.memory_space<smem>>
    %132 = arith.index_cast %131 : i32 to index
    %c0_53 = arith.constant 0 : index
    %133 = vector.load %arg2[%132, %c0_53] : memref<64x32xf32, #tpu.memory_space<vmem>>, vector<1x32xf32>
    %134 = arith.index_cast %c3_i32_42 : i32 to index
    %c64_54 = arith.constant 64 : index
    %135 = vector.load %arg3[%134, %c64_54] : memref<8x128xf32, #tpu.memory_space<vmem>>, vector<1x32xf32>
    tpu.vector_store %arg3[%134, %c64_54], %133 {strides = array<i32>} : memref<8x128xf32, #tpu.memory_space<vmem>>, vector<1x32xf32>,
    %c4_i32_55 = arith.constant 4 : i32
    %136 = arith.muli %c3_i32_42, %c4_i32_55 : i32
    %137 = arith.addi %0, %136 : i32
    %c3_i32_56 = arith.constant 3 : i32
    %138 = arith.addi %137, %c3_i32_56 : i32
    %139 = arith.index_cast %138 : i32 to index
    %140 = memref.load %arg1[%139] : memref<32xi32, #tpu.memory_space<smem>>
    %141 = arith.index_cast %140 : i32 to index
    %c0_57 = arith.constant 0 : index
    %142 = vector.load %arg2[%141, %c0_57] : memref<64x32xf32, #tpu.memory_space<vmem>>, vector<1x32xf32>
    %143 = arith.index_cast %c3_i32_42 : i32 to index
    %c96_58 = arith.constant 96 : index
    %144 = vector.load %arg3[%143, %c96_58] : memref<8x128xf32, #tpu.memory_space<vmem>>, vector<1x32xf32>
    tpu.vector_store %arg3[%143, %c96_58], %142 {strides = array<i32>} : memref<8x128xf32, #tpu.memory_space<vmem>>, vector<1x32xf32>,
    %c4_i32_59 = arith.constant 4 : i32
    %c4_i32_60 = arith.constant 4 : i32
    %145 = arith.muli %c4_i32_59, %c4_i32_60 : i32
    %146 = arith.addi %0, %145 : i32
    %c0_i32_61 = arith.constant 0 : i32
    %147 = arith.addi %146, %c0_i32_61 : i32
    %148 = arith.index_cast %147 : i32 to index
    %149 = memref.load %arg1[%148] : memref<32xi32, #tpu.memory_space<smem>>
    %150 = arith.index_cast %149 : i32 to index
    %c0_62 = arith.constant 0 : index
    %151 = vector.load %arg2[%150, %c0_62] : memref<64x32xf32, #tpu.memory_space<vmem>>, vector<1x32xf32>
    %152 = arith.index_cast %c4_i32_59 : i32 to index
    %c0_63 = arith.constant 0 : index
    %153 = vector.load %arg3[%152, %c0_63] : memref<8x128xf32, #tpu.memory_space<vmem>>, vector<1x32xf32>
    tpu.vector_store %arg3[%152, %c0_63], %151 {strides = array<i32>} : memref<8x128xf32, #tpu.memory_space<vmem>>, vector<1x32xf32>,
    %c4_i32_64 = arith.constant 4 : i32
    %154 = arith.muli %c4_i32_59, %c4_i32_64 : i32
    %155 = arith.addi %0, %154 : i32
    %c1_i32_65 = arith.constant 1 : i32
    %156 = arith.addi %155, %c1_i32_65 : i32
    %157 = arith.index_cast %156 : i32 to index
    %158 = memref.load %arg1[%157] : memref<32xi32, #tpu.memory_space<smem>>
    %159 = arith.index_cast %158 : i32 to index
    %c0_66 = arith.constant 0 : index
    %160 = vector.load %arg2[%159, %c0_66] : memref<64x32xf32, #tpu.memory_space<vmem>>, vector<1x32xf32>
    %161 = arith.index_cast %c4_i32_59 : i32 to index
    %c32_67 = arith.constant 32 : index
    %162 = vector.load %arg3[%161, %c32_67] : memref<8x128xf32, #tpu.memory_space<vmem>>, vector<1x32xf32>
    tpu.vector_store %arg3[%161, %c32_67], %160 {strides = array<i32>} : memref<8x128xf32, #tpu.memory_space<vmem>>, vector<1x32xf32>,
    %c4_i32_68 = arith.constant 4 : i32
    %163 = arith.muli %c4_i32_59, %c4_i32_68 : i32
    %164 = arith.addi %0, %163 : i32
    %c2_i32_69 = arith.constant 2 : i32
    %165 = arith.addi %164, %c2_i32_69 : i32
    %166 = arith.index_cast %165 : i32 to index
    %167 = memref.load %arg1[%166] : memref<32xi32, #tpu.memory_space<smem>>
    %168 = arith.index_cast %167 : i32 to index
    %c0_70 = arith.constant 0 : index
    %169 = vector.load %arg2[%168, %c0_70] : memref<64x32xf32, #tpu.memory_space<vmem>>, vector<1x32xf32>
    %170 = arith.index_cast %c4_i32_59 : i32 to index
    %c64_71 = arith.constant 64 : index
    %171 = vector.load %arg3[%170, %c64_71] : memref<8x128xf32, #tpu.memory_space<vmem>>, vector<1x32xf32>
    tpu.vector_store %arg3[%170, %c64_71], %169 {strides = array<i32>} : memref<8x128xf32, #tpu.memory_space<vmem>>, vector<1x32xf32>,
    %c4_i32_72 = arith.constant 4 : i32
    %172 = arith.muli %c4_i32_59, %c4_i32_72 : i32
    %173 = arith.addi %0, %172 : i32
    %c3_i32_73 = arith.constant 3 : i32
    %174 = arith.addi %173, %c3_i32_73 : i32
    %175 = arith.index_cast %174 : i32 to index
    %176 = memref.load %arg1[%175] : memref<32xi32, #tpu.memory_space<smem>>
    %177 = arith.index_cast %176 : i32 to index
    %c0_74 = arith.constant 0 : index
    %178 = vector.load %arg2[%177, %c0_74] : memref<64x32xf32, #tpu.memory_space<vmem>>, vector<1x32xf32>
    %179 = arith.index_cast %c4_i32_59 : i32 to index
    %c96_75 = arith.constant 96 : index
    %180 = vector.load %arg3[%179, %c96_75] : memref<8x128xf32, #tpu.memory_space<vmem>>, vector<1x32xf32>
    tpu.vector_store %arg3[%179, %c96_75], %178 {strides = array<i32>} : memref<8x128xf32, #tpu.memory_space<vmem>>, vector<1x32xf32>,
    %c5_i32 = arith.constant 5 : i32
    %c4_i32_76 = arith.constant 4 : i32
    %181 = arith.muli %c5_i32, %c4_i32_76 : i32
    %182 = arith.addi %0, %181 : i32
    %c0_i32_77 = arith.constant 0 : i32
    %183 = arith.addi %182, %c0_i32_77 : i32
    %184 = arith.index_cast %183 : i32 to index
    %185 = memref.load %arg1[%184] : memref<32xi32, #tpu.memory_space<smem>>
    %186 = arith.index_cast %185 : i32 to index
    %c0_78 = arith.constant 0 : index
    %187 = vector.load %arg2[%186, %c0_78] : memref<64x32xf32, #tpu.memory_space<vmem>>, vector<1x32xf32>
    %188 = arith.index_cast %c5_i32 : i32 to index
    %c0_79 = arith.constant 0 : index
    %189 = vector.load %arg3[%188, %c0_79] : memref<8x128xf32, #tpu.memory_space<vmem>>, vector<1x32xf32>
    tpu.vector_store %arg3[%188, %c0_79], %187 {strides = array<i32>} : memref<8x128xf32, #tpu.memory_space<vmem>>, vector<1x32xf32>,
    %c4_i32_80 = arith.constant 4 : i32
    %190 = arith.muli %c5_i32, %c4_i32_80 : i32
    %191 = arith.addi %0, %190 : i32
    %c1_i32_81 = arith.constant 1 : i32
    %192 = arith.addi %191, %c1_i32_81 : i32
    %193 = arith.index_cast %192 : i32 to index
    %194 = memref.load %arg1[%193] : memref<32xi32, #tpu.memory_space<smem>>
    %195 = arith.index_cast %194 : i32 to index
    %c0_82 = arith.constant 0 : index
    %196 = vector.load %arg2[%195, %c0_82] : memref<64x32xf32, #tpu.memory_space<vmem>>, vector<1x32xf32>
    %197 = arith.index_cast %c5_i32 : i32 to index
    %c32_83 = arith.constant 32 : index
    %198 = vector.load %arg3[%197, %c32_83] : memref<8x128xf32, #tpu.memory_space<vmem>>, vector<1x32xf32>
    tpu.vector_store %arg3[%197, %c32_83], %196 {strides = array<i32>} : memref<8x128xf32, #tpu.memory_space<vmem>>, vector<1x32xf32>,
    %c4_i32_84 = arith.constant 4 : i32
    %199 = arith.muli %c5_i32, %c4_i32_84 : i32
    %200 = arith.addi %0, %199 : i32
    %c2_i32_85 = arith.constant 2 : i32
    %201 = arith.addi %200, %c2_i32_85 : i32
    %202 = arith.index_cast %201 : i32 to index
    %203 = memref.load %arg1[%202] : memref<32xi32, #tpu.memory_space<smem>>
    %204 = arith.index_cast %203 : i32 to index
    %c0_86 = arith.constant 0 : index
    %205 = vector.load %arg2[%204, %c0_86] : memref<64x32xf32, #tpu.memory_space<vmem>>, vector<1x32xf32>
    %206 = arith.index_cast %c5_i32 : i32 to index
    %c64_87 = arith.constant 64 : index
    %207 = vector.load %arg3[%206, %c64_87] : memref<8x128xf32, #tpu.memory_space<vmem>>, vector<1x32xf32>
    tpu.vector_store %arg3[%206, %c64_87], %205 {strides = array<i32>} : memref<8x128xf32, #tpu.memory_space<vmem>>, vector<1x32xf32>,
    %c4_i32_88 = arith.constant 4 : i32
    %208 = arith.muli %c5_i32, %c4_i32_88 : i32
    %209 = arith.addi %0, %208 : i32
    %c3_i32_89 = arith.constant 3 : i32
    %210 = arith.addi %209, %c3_i32_89 : i32
    %211 = arith.index_cast %210 : i32 to index
    %212 = memref.load %arg1[%211] : memref<32xi32, #tpu.memory_space<smem>>
    %213 = arith.index_cast %212 : i32 to index
    %c0_90 = arith.constant 0 : index
    %214 = vector.load %arg2[%213, %c0_90] : memref<64x32xf32, #tpu.memory_space<vmem>>, vector<1x32xf32>
    %215 = arith.index_cast %c5_i32 : i32 to index
    %c96_91 = arith.constant 96 : index
    %216 = vector.load %arg3[%215, %c96_91] : memref<8x128xf32, #tpu.memory_space<vmem>>, vector<1x32xf32>
    tpu.vector_store %arg3[%215, %c96_91], %214 {strides = array<i32>} : memref<8x128xf32, #tpu.memory_space<vmem>>, vector<1x32xf32>,
    %c6_i32 = arith.constant 6 : i32
    %c4_i32_92 = arith.constant 4 : i32
    %217 = arith.muli %c6_i32, %c4_i32_92 : i32
    %218 = arith.addi %0, %217 : i32
    %c0_i32_93 = arith.constant 0 : i32
    %219 = arith.addi %218, %c0_i32_93 : i32
    %220 = arith.index_cast %219 : i32 to index
    %221 = memref.load %arg1[%220] : memref<32xi32, #tpu.memory_space<smem>>
    %222 = arith.index_cast %221 : i32 to index
    %c0_94 = arith.constant 0 : index
    %223 = vector.load %arg2[%222, %c0_94] : memref<64x32xf32, #tpu.memory_space<vmem>>, vector<1x32xf32>
    %224 = arith.index_cast %c6_i32 : i32 to index
    %c0_95 = arith.constant 0 : index
    %225 = vector.load %arg3[%224, %c0_95] : memref<8x128xf32, #tpu.memory_space<vmem>>, vector<1x32xf32>
    tpu.vector_store %arg3[%224, %c0_95], %223 {strides = array<i32>} : memref<8x128xf32, #tpu.memory_space<vmem>>, vector<1x32xf32>,
    %c4_i32_96 = arith.constant 4 : i32
    %226 = arith.muli %c6_i32, %c4_i32_96 : i32
    %227 = arith.addi %0, %226 : i32
    %c1_i32_97 = arith.constant 1 : i32
    %228 = arith.addi %227, %c1_i32_97 : i32
    %229 = arith.index_cast %228 : i32 to index
    %230 = memref.load %arg1[%229] : memref<32xi32, #tpu.memory_space<smem>>
    %231 = arith.index_cast %230 : i32 to index
    %c0_98 = arith.constant 0 : index
    %232 = vector.load %arg2[%231, %c0_98] : memref<64x32xf32, #tpu.memory_space<vmem>>, vector<1x32xf32>
    %233 = arith.index_cast %c6_i32 : i32 to index
    %c32_99 = arith.constant 32 : index
    %234 = vector.load %arg3[%233, %c32_99] : memref<8x128xf32, #tpu.memory_space<vmem>>, vector<1x32xf32>
    tpu.vector_store %arg3[%233, %c32_99], %232 {strides = array<i32>} : memref<8x128xf32, #tpu.memory_space<vmem>>, vector<1x32xf32>,
    %c4_i32_100 = arith.constant 4 : i32
    %235 = arith.muli %c6_i32, %c4_i32_100 : i32
    %236 = arith.addi %0, %235 : i32
    %c2_i32_101 = arith.constant 2 : i32
    %237 = arith.addi %236, %c2_i32_101 : i32
    %238 = arith.index_cast %237 : i32 to index
    %239 = memref.load %arg1[%238] : memref<32xi32, #tpu.memory_space<smem>>
    %240 = arith.index_cast %239 : i32 to index
    %c0_102 = arith.constant 0 : index
    %241 = vector.load %arg2[%240, %c0_102] : memref<64x32xf32, #tpu.memory_space<vmem>>, vector<1x32xf32>
    %242 = arith.index_cast %c6_i32 : i32 to index
    %c64_103 = arith.constant 64 : index
    %243 = vector.load %arg3[%242, %c64_103] : memref<8x128xf32, #tpu.memory_space<vmem>>, vector<1x32xf32>
    tpu.vector_store %arg3[%242, %c64_103], %241 {strides = array<i32>} : memref<8x128xf32, #tpu.memory_space<vmem>>, vector<1x32xf32>,
    %c4_i32_104 = arith.constant 4 : i32
    %244 = arith.muli %c6_i32, %c4_i32_104 : i32
    %245 = arith.addi %0, %244 : i32
    %c3_i32_105 = arith.constant 3 : i32
    %246 = arith.addi %245, %c3_i32_105 : i32
    %247 = arith.index_cast %246 : i32 to index
    %248 = memref.load %arg1[%247] : memref<32xi32, #tpu.memory_space<smem>>
    %249 = arith.index_cast %248 : i32 to index
    %c0_106 = arith.constant 0 : index
    %250 = vector.load %arg2[%249, %c0_106] : memref<64x32xf32, #tpu.memory_space<vmem>>, vector<1x32xf32>
    %251 = arith.index_cast %c6_i32 : i32 to index
    %c96_107 = arith.constant 96 : index
    %252 = vector.load %arg3[%251, %c96_107] : memref<8x128xf32, #tpu.memory_space<vmem>>, vector<1x32xf32>
    tpu.vector_store %arg3[%251, %c96_107], %250 {strides = array<i32>} : memref<8x128xf32, #tpu.memory_space<vmem>>, vector<1x32xf32>,
    %c7_i32 = arith.constant 7 : i32
    %c4_i32_108 = arith.constant 4 : i32
    %253 = arith.muli %c7_i32, %c4_i32_108 : i32
    %254 = arith.addi %0, %253 : i32
    %c0_i32_109 = arith.constant 0 : i32
    %255 = arith.addi %254, %c0_i32_109 : i32
    %256 = arith.index_cast %255 : i32 to index
    %257 = memref.load %arg1[%256] : memref<32xi32, #tpu.memory_space<smem>>
    %258 = arith.index_cast %257 : i32 to index
    %c0_110 = arith.constant 0 : index
    %259 = vector.load %arg2[%258, %c0_110] : memref<64x32xf32, #tpu.memory_space<vmem>>, vector<1x32xf32>
    %260 = arith.index_cast %c7_i32 : i32 to index
    %c0_111 = arith.constant 0 : index
    %261 = vector.load %arg3[%260, %c0_111] : memref<8x128xf32, #tpu.memory_space<vmem>>, vector<1x32xf32>
    tpu.vector_store %arg3[%260, %c0_111], %259 {strides = array<i32>} : memref<8x128xf32, #tpu.memory_space<vmem>>, vector<1x32xf32>,
    %c4_i32_112 = arith.constant 4 : i32
    %262 = arith.muli %c7_i32, %c4_i32_112 : i32
    %263 = arith.addi %0, %262 : i32
    %c1_i32_113 = arith.constant 1 : i32
    %264 = arith.addi %263, %c1_i32_113 : i32
    %265 = arith.index_cast %264 : i32 to index
    %266 = memref.load %arg1[%265] : memref<32xi32, #tpu.memory_space<smem>>
    %267 = arith.index_cast %266 : i32 to index
    %c0_114 = arith.constant 0 : index
    %268 = vector.load %arg2[%267, %c0_114] : memref<64x32xf32, #tpu.memory_space<vmem>>, vector<1x32xf32>
    %269 = arith.index_cast %c7_i32 : i32 to index
    %c32_115 = arith.constant 32 : index
    %270 = vector.load %arg3[%269, %c32_115] : memref<8x128xf32, #tpu.memory_space<vmem>>, vector<1x32xf32>
    tpu.vector_store %arg3[%269, %c32_115], %268 {strides = array<i32>} : memref<8x128xf32, #tpu.memory_space<vmem>>, vector<1x32xf32>,
    %c4_i32_116 = arith.constant 4 : i32
    %271 = arith.muli %c7_i32, %c4_i32_116 : i32
    %272 = arith.addi %0, %271 : i32
    %c2_i32_117 = arith.constant 2 : i32
    %273 = arith.addi %272, %c2_i32_117 : i32
    %274 = arith.index_cast %273 : i32 to index
    %275 = memref.load %arg1[%274] : memref<32xi32, #tpu.memory_space<smem>>
    %276 = arith.index_cast %275 : i32 to index
    %c0_118 = arith.constant 0 : index
    %277 = vector.load %arg2[%276, %c0_118] : memref<64x32xf32, #tpu.memory_space<vmem>>, vector<1x32xf32>
    %278 = arith.index_cast %c7_i32 : i32 to index
    %c64_119 = arith.constant 64 : index
    %279 = vector.load %arg3[%278, %c64_119] : memref<8x128xf32, #tpu.memory_space<vmem>>, vector<1x32xf32>
    tpu.vector_store %arg3[%278, %c64_119], %277 {strides = array<i32>} : memref<8x128xf32, #tpu.memory_space<vmem>>, vector<1x32xf32>,
    %c4_i32_120 = arith.constant 4 : i32
    %280 = arith.muli %c7_i32, %c4_i32_120 : i32
    %281 = arith.addi %0, %280 : i32
    %c3_i32_121 = arith.constant 3 : i32
    %282 = arith.addi %281, %c3_i32_121 : i32
    %283 = arith.index_cast %282 : i32 to index
    %284 = memref.load %arg1[%283] : memref<32xi32, #tpu.memory_space<smem>>
    %285 = arith.index_cast %284 : i32 to index
    %c0_122 = arith.constant 0 : index
    %286 = vector.load %arg2[%285, %c0_122] : memref<64x32xf32, #tpu.memory_space<vmem>>, vector<1x32xf32>
    %287 = arith.index_cast %c7_i32 : i32 to index
    %c96_123 = arith.constant 96 : index
    %288 = vector.load %arg3[%287, %c96_123] : memref<8x128xf32, #tpu.memory_space<vmem>>, vector<1x32xf32>
    tpu.vector_store %arg3[%287, %c96_123], %286 {strides = array<i32>} : memref<8x128xf32, #tpu.memory_space<vmem>>, vector<1x32xf32>,
    %c8_i32 = arith.constant 8 : i32
    return
  }
  func.func @transform_0(%arg0: i32, %arg1: memref<32xi32, #tpu.memory_space<smem>>) -> (i32, i32) {
    %c0_i32 = arith.constant 0 : i32
    %c0_i32_0 = arith.constant 0 : i32
    %c0_i32_1 = arith.constant 0 : i32
    return %c0_i32, %c0_i32_0 : i32, i32
  }
  func.func @transform_1(%arg0: i32, %arg1: memref<32xi32, #tpu.memory_space<smem>>) -> (i32, i32) {
    %c0_i32 = arith.constant 0 : i32
    %c0_i32_0 = arith.constant 0 : i32
    return %arg0, %c0_i32 : i32, i32
  }
}

</mosaic_0001>

<bundles_post_ra>
// kernel: tpu_custom_call.1
= control target key start
LH: loop header
LB: loop body
LE: loop exit
PB: predicated region body
PF: predicated region fallthrough
CT: control target
= control target key end

     0   :  { %s402_s12 = smov [#allocation3]   ;;  %s580_s0 = inlined_call_operand.vmem [shape: s32[32], index: 0, kind: input, shape index: {}]   ;;  %s581_s1 = inlined_call_operand.vmem [shape: f32[64,32], index: 1, kind: input, shape index: {}]   ;;  %s582_s2 = inlined_call_operand.hbm [shape: f32[8,128], index: 2, kind: output, shape index: {}]  }
   0x1   :  { %s8_s11 = sshll.u32 %s580_s0, 4  ;;  %s9_s11 = int_to_ptr.vmem [resolvable:$true] %s8_s11 }
   0x2   :  { %11 = dma.vmem_to_smem %s9_s11, 16, %s402_s12, [#allocation2] }
   0x3   :  { %398 = dma.done.wait [#allocation2], 16 }
   0x4   :  { %399 = vsyncadd [#allocation2], 4294967280 }
   0x5   :  { %14 = sfence }
   0x6   :  { %s328_s13 = sld [smem:[#allocation3 + $0x3]] }
   0x7   :  { %15 = vsyncpa [#allocation5], 0  ;;  %s326_s14 = sld [smem:[#allocation3 + $0x1]]  ;;  %s403_s23 = smov 96   ;;  %vm22_vm0 = vcmask 253952   ;;  %vm32_vm1 = vcmask 516352  }
   0x8   :  { %s330_s15 = sld [smem:[#allocation3 + $0x5]]  ;;  %s404_s24 = smov 32   ;;  %vm42_vm2 = vcmask 778752   ;;  %vm52_vm3 = vcmask 1041152  }
   0x9   :  { %s327_s16 = sld [smem:[#allocation3 + $0x2]]  ;;  %s405_s9 = smov 64  }
   0xa   :  { %s331_s20 = sld [smem:[#allocation3 + $0x6]] }
   0xb   :  { %s332_s25 = sld [smem:[#allocation3 + $0x7]] }
   0xc   :  { %s46_s19 = scalar_lea.vmem %s581_s1, %s328_s13  ;;  %s335_s29 = sld [smem:[#allocation3 + $0xa]] }
   0xd   :  { %v47_v0 = vld [vmem:[%s46_s19] sm:$0x1]  ;;  %s26_s0 = scalar_lea.vmem %s581_s1, %s326_s14  ;;  %s334_s5 = sld [smem:[#allocation3 + $0x9]] }
   0xe   :  { %49 = vrot.lane.b32.xlu1 %v47_v0, %s403_s23  ;;  %v27_v1 = vld [vmem:[%s26_s0] sm:$0x1]  ;;  %s61_s28 = scalar_lea.vmem %s581_s1, %s330_s15  ;;  %s336_s13 = sld [smem:[#allocation3 + $0xb]] }
   0xf   :  { %29 = vrot.lane.b32.xlu0 %v27_v1, %s404_s24  ;;  %s36_s4 = scalar_lea.vmem %s581_s1, %s327_s16  ;;  %v62_v2 = vld [vmem:[%s61_s28] sm:$0x1]  ;;  %s342_s17 = sld [smem:[#allocation3 + $0x11]] }
  0x10   :  { %s70_s8 = scalar_lea.vmem %s581_s1, %s331_s20  ;;  %v37_v4 = vld [vmem:[%s36_s4] sm:$0x1]  ;;  %s338_s21 = sld [smem:[#allocation3 + $0xd]] }
  0x11   :  { %v71_v3 = vld [vmem:[%s70_s8] sm:$0x1]  ;;  %s79_s12 = scalar_lea.vmem %s581_s1, %s332_s25  ;;  %s346_s26 = sld [smem:[#allocation3 + $0x15]] }
  0x12   :  { %73 = vrot.lane.b32.xlu2 %v71_v3, %s405_s9  ;;  %s102_s16 = scalar_lea.vmem %s581_s1, %s335_s29  ;;  %v80_v5 = vld [vmem:[%s79_s12] sm:$0x1]  ;;  %s354_s30 = sld [smem:[#allocation3 + $0x1d]] }
  0x13   :  { %s93_s20 = scalar_lea.vmem %s581_s1, %s334_s5  ;;  %v103_v6 = vld [vmem:[%s102_s16] sm:$0x1]  ;;  %s350_s6 = sld [smem:[#allocation3 + $0x19]] }
  0x14   :  { %v94_v7 = vld [vmem:[%s93_s20] sm:$0x1]  ;;  %s111_s25 = scalar_lea.vmem %s581_s1, %s336_s13  ;;  %s339_s11 = sld [smem:[#allocation3 + $0xe]] }
  0x15   :  { %s157_s29 = scalar_lea.vmem %s581_s1, %s342_s17  ;;  %v112_v8 = vld [vmem:[%s111_s25] sm:$0x1]  ;;  %s347_s15 = sld [smem:[#allocation3 + $0x16]] }
  0x16   :  { %64 = vrot.lane.b32.xlu1 %v62_v2, %s404_s24  ;;  %s125_s5 = scalar_lea.vmem %s581_s1, %s338_s21  ;;  %v158_v9 = vld [vmem:[%s157_s29] sm:$0x1]  ;;  %s343_s19 = sld [smem:[#allocation3 + $0x12]] }
  0x17   :  { %39 = vrot.lane.b32.xlu0 %v37_v4, %s405_s9  ;;  %v126_v10 = vld [vmem:[%s125_s5] sm:$0x1]  ;;  %s189_s10 = scalar_lea.vmem %s581_s1, %s346_s26  ;;  %s351_s0 = sld [smem:[#allocation3 + $0x1a]] }
  0x18   :  { %s253_s14 = scalar_lea.vmem %s581_s1, %s354_s30  ;;  %v190_v11 = vld [vmem:[%s189_s10] sm:$0x1]  ;;  %s340_s28 = sld [smem:[#allocation3 + $0xf]] }
  0x19   :  { %s221_s18 = scalar_lea.vmem %s581_s1, %s350_s6  ;;  %v254_v12 = vld [vmem:[%s253_s14] sm:$0x1]  ;;  %s355_s4 = sld [smem:[#allocation3 + $0x1e]] }
  0x1a   :  { %82 = vrot.lane.b32.xlu2 %v80_v5, %s403_s23  ;;  %v222_v13 = vld [vmem:[%s221_s18] sm:$0x1]  ;;  %s134_s22 = scalar_lea.vmem %s581_s1, %s339_s11  ;;  %s344_s7 = sld [smem:[#allocation3 + $0x13]] }
  0x1b   :  { %s198_s27 = scalar_lea.vmem %s581_s1, %s347_s15  ;;  %v135_v14 = vld [vmem:[%s134_s22] sm:$0x1]  ;;  %s352_s12 = sld [smem:[#allocation3 + $0x1b]] }
  0x1c   :  { %s166_s3 = scalar_lea.vmem %s581_s1, %s343_s19  ;;  %v199_v15 = vld [vmem:[%s198_s27] sm:$0x1]  ;;  %s348_s16 = sld [smem:[#allocation3 + $0x17]] }
  0x1d   :  { %v167_v16 = vld [vmem:[%s166_s3] sm:$0x1]  ;;  %s356_s20 = sld [smem:[#allocation3 + $0x1f]] }
  0x1e   :  { %105 = vrot.lane.b32.xlu1 %v103_v6, %s405_s9  ;;  %s143_s11 = scalar_lea.vmem %s581_s1, %s340_s28  ;;  %s329_s3 = sld [smem:[#allocation3 + $0x4]] }
  0x1f   :  { %96 = vrot.lane.b32.xlu0 %v94_v7, %s404_s24  ;;  %s262_s15 = scalar_lea.vmem %s581_s1, %s355_s4  ;;  %v144_v18 = vld [vmem:[%s143_s11] sm:$0x1]  ;;  %s333_s10 = sld [smem:[#allocation3 + $0x8]] }
  0x20   :  { %v263_v19 = vld [vmem:[%s262_s15] sm:$0x1]  ;;  %s175_s19 = scalar_lea.vmem %s581_s1, %s344_s7  ;;  %s345_s11 = sld [smem:[#allocation3 + $0x14]] }
  0x21   :  { %v176_v20 = vld [vmem:[%s175_s19] sm:$0x1]  ;;  %s337_s15 = sld [smem:[#allocation3 + $0xc]]  ;;  %s285_s7 = sshll.u32 %s582_s2, 4  ;;  %s286_s7 = int_to_ptr.hbm [resolvable:$true] %s285_s7 }
  0x22   :  { %114 = vrot.lane.b32.xlu2 %v112_v8, %s403_s23  ;;  %s207_s27 = scalar_lea.vmem %s581_s1, %s348_s16  ;;  %s353_s16 = sld [smem:[#allocation3 + $0x1c]] }
  0x23   :  { %v208_v22 = vld [vmem:[%s207_s27] sm:$0x1]  ;;  %s271_s30 = scalar_lea.vmem %s581_s1, %s356_s20  ;;  %s349_s27 = sld [smem:[#allocation3 + $0x18]] }
  0x24   :  { %v272_v23 = vld [vmem:[%s271_s30] sm:$0x1]  ;;  %s56_s8 = scalar_lea.vmem %s581_s1, %s329_s3 }
  0x25   :  { %v57_v25 = vld [vmem:[%s56_s8] sm:$0x1]  ;;  %s88_s14 = scalar_lea.vmem %s581_s1, %s333_s10 }
  0x26   :  { %160 = vrot.lane.b32.xlu1 %v158_v9, %s404_s24  ;;  %58 = vst.msk [vmem:[#allocation4 + $0x1] sm:$0x1] %vm22_vm0, %v57_v25  ;;  %v89_v27 = vld [vmem:[%s88_s14] sm:$0x1]  ;;  %s184_s19 = scalar_lea.vmem %s581_s1, %s345_s11 }
  0x27   :  { %128 = vrot.lane.b32.xlu0 %v126_v10, %s404_s24  ;;  %90 = vst.msk [vmem:[#allocation4 + $0x2] sm:$0x1] %vm22_vm0, %v89_v27  ;;  %v185_v28 = vld [vmem:[%s184_s19] sm:$0x1]  ;;  %s120_s26 = scalar_lea.vmem %s581_s1, %s337_s15 }
  0x28   :  { %186 = vst.msk [vmem:[#allocation4 + $0x5] sm:$0x1] %vm22_vm0, %v185_v28  ;;  %s248_s30 = scalar_lea.vmem %s581_s1, %s353_s16  ;;  %v121_v31 = vld [vmem:[%s120_s26] sm:$0x1] }
  0x29   :  { %122 = vst.msk [vmem:[#allocation4 + $0x3] sm:$0x1] %vm22_vm0, %v121_v31  ;;  %v249_v32 = vld [vmem:[%s248_s30] sm:$0x1]  ;;  %s216_s4 = scalar_lea.vmem %s581_s1, %s349_s27 }
  0x2a   :  { %192 = vrot.lane.b32.xlu2 %v190_v11, %s404_s24  ;;  %250 = vst.msk [vmem:[#allocation4 + $0x7] sm:$0x1] %vm22_vm0, %v249_v32  ;;  %v217_v36 = vld [vmem:[%s216_s4] sm:$0x1] }
  0x2b   :  { %218 = vst.msk [vmem:[#allocation4 + $0x6] sm:$0x1] %vm22_vm0, %v217_v36 }
  0x2e   :  { %256 = vrot.lane.b32.xlu1 %v254_v12, %s404_s24 }
  0x2f   :  { %224 = vrot.lane.b32.xlu0 %v222_v13, %s404_s24  ;;  %s230_s24 = scalar_lea.vmem %s581_s1, %s351_s0  ;;  %s239_s0 = scalar_lea.vmem %s581_s1, %s352_s12 }
  0x30   :  { %v231_v17 = vld [vmem:[%s230_s24] sm:$0x1] }
  0x31   :  { %v240_v21 = vld [vmem:[%s239_s0] sm:$0x1] }
  0x32   :  { %137 = vrot.lane.b32.xlu2 %v135_v14, %s405_s9 }
  0x36   :  { %201 = vrot.lane.b32.xlu1 %v199_v15, %s405_s9 }
  0x37   :  { %169 = vrot.lane.b32.xlu0 %v167_v16, %s405_s9 }
  0x3a   :  { %233 = vrot.lane.b32.xlu2 %v231_v17, %s405_s9 }
  0x3e   :  { %146 = vrot.lane.b32.xlu1 %v144_v18, %s403_s23 }
  0x3f   :  { %265 = vrot.lane.b32.xlu0 %v263_v19, %s405_s9  ;;  %s19_s9 = sld [smem:[#allocation3]] }
  0x42   :  { %178 = vrot.lane.b32.xlu2 %v176_v20, %s403_s23 }
  0x45   :  { %s20_s6 = scalar_lea.vmem %s581_s1, %s19_s9 }
  0x46   :  { %242 = vrot.lane.b32.xlu1 %v240_v21, %s403_s23  ;;  %v21_v24 = vld [vmem:[%s20_s6] sm:$0x1] }
  0x47   :  { %210 = vrot.lane.b32.xlu0 %v208_v22, %s403_s23  ;;  %23 = vst.msk [vmem:[#allocation4] sm:$0x1] %vm22_vm0, %v21_v24 }
  0x4a   :  { %274 = vrot.lane.b32.xlu2 %v272_v23, %s403_s23  ;;  %s341_s23 = sld [smem:[#allocation3 + $0x10]] }
  0x50   :  { %s152_s22 = scalar_lea.vmem %s581_s1, %s341_s23  ;;  %s406_s1 = smov [#allocation4]  }
  0x51   :  { %v153_v29 = vld [vmem:[%s152_s22] sm:$0x1]  ;;  %s283_s5 = sshll.u32 %s406_s1, 4  ;;  %s284_s5 = int_to_ptr.vmem [resolvable:$true] %s283_s5 }
  0x52   :  { %154 = vst.msk [vmem:[#allocation4 + $0x4] sm:$0x1] %vm22_vm0, %v153_v29 }
  0x6c   :  { %v74_v26 = vpop.permute.xlu2 %73 }
  0x74   :  { %v83_v30 = vpop.permute.xlu2 %82 }
  0x7c   :  { %v115_v33 = vpop.permute.xlu2 %114 }
  0x80   :  { %v50_v34 = vpop.permute.xlu1 %49 }
  0x81   :  { %v30_v35 = vpop.permute.xlu0 %29 }
  0x82   :  { %33 = vst.msk [vmem:[#allocation4] sm:$0x1] %vm32_vm1, %v30_v35 }
  0x84   :  { %v193_v37 = vpop.permute.xlu2 %192 }
  0x85   :  { %195 = vst.msk [vmem:[#allocation4 + $0x5] sm:$0x1] %vm32_vm1, %v193_v37 }
  0x88   :  { %v65_v38 = vpop.permute.xlu1 %64 }
  0x89   :  { %67 = vst.msk [vmem:[#allocation4 + $0x1] sm:$0x1] %vm32_vm1, %v65_v38  ;;  %v40_v39 = vpop.permute.xlu0 %39 }
  0x8a   :  { %76 = vst.msk [vmem:[#allocation4 + $0x1] sm:$0x1] %vm42_vm2, %v74_v26 }
  0x8b   :  { %85 = vst.msk [vmem:[#allocation4 + $0x1] sm:$0x1] %vm52_vm3, %v83_v30 }
  0x8c   :  { %43 = vst.msk [vmem:[#allocation4] sm:$0x1] %vm42_vm2, %v40_v39  ;;  %v138_v42 = vpop.permute.xlu2 %137 }
  0x8d   :  { %53 = vst.msk [vmem:[#allocation4] sm:$0x1] %vm52_vm3, %v50_v34 }
  0x90   :  { %v106_v40 = vpop.permute.xlu1 %105 }
  0x91   :  { %v97_v41 = vpop.permute.xlu0 %96 }
  0x92   :  { %99 = vst.msk [vmem:[#allocation4 + $0x2] sm:$0x1] %vm32_vm1, %v97_v41 }
  0x93   :  { %108 = vst.msk [vmem:[#allocation4 + $0x2] sm:$0x1] %vm42_vm2, %v106_v40 }
  0x94   :  { %117 = vst.msk [vmem:[#allocation4 + $0x2] sm:$0x1] %vm52_vm3, %v115_v33  ;;  %v234_v45 = vpop.permute.xlu2 %233 }
  0x98   :  { %v161_v43 = vpop.permute.xlu1 %160 }
  0x99   :  { %163 = vst.msk [vmem:[#allocation4 + $0x4] sm:$0x1] %vm32_vm1, %v161_v43  ;;  %v129_v44 = vpop.permute.xlu0 %128 }
  0x9a   :  { %131 = vst.msk [vmem:[#allocation4 + $0x3] sm:$0x1] %vm32_vm1, %v129_v44 }
  0x9b   :  { %140 = vst.msk [vmem:[#allocation4 + $0x3] sm:$0x1] %vm42_vm2, %v138_v42 }
  0x9c   :  { %v179_v48 = vpop.permute.xlu2 %178 }
  0xa0   :  { %v257_v46 = vpop.permute.xlu1 %256 }
  0xa1   :  { %259 = vst.msk [vmem:[#allocation4 + $0x7] sm:$0x1] %vm32_vm1, %v257_v46  ;;  %v225_v47 = vpop.permute.xlu0 %224 }
  0xa2   :  { %227 = vst.msk [vmem:[#allocation4 + $0x6] sm:$0x1] %vm32_vm1, %v225_v47 }
  0xa3   :  { %236 = vst.msk [vmem:[#allocation4 + $0x6] sm:$0x1] %vm42_vm2, %v234_v45 }
  0xa4   :  { %v275_v52 = vpop.permute.xlu2 %274 }
  0xa8   :  { %v202_v49 = vpop.permute.xlu1 %201 }
  0xa9   :  { %204 = vst.msk [vmem:[#allocation4 + $0x5] sm:$0x1] %vm42_vm2, %v202_v49  ;;  %v170_v50 = vpop.permute.xlu0 %169 }
  0xaa   :  { %172 = vst.msk [vmem:[#allocation4 + $0x4] sm:$0x1] %vm42_vm2, %v170_v50 }
  0xab   :  { %181 = vst.msk [vmem:[#allocation4 + $0x4] sm:$0x1] %vm52_vm3, %v179_v48 }
  0xb0   :  { %v147_v51 = vpop.permute.xlu1 %146 }
  0xb1   :  { %149 = vst.msk [vmem:[#allocation4 + $0x3] sm:$0x1] %vm52_vm3, %v147_v51  ;;  %v266_v53 = vpop.permute.xlu0 %265 }
  0xb2   :  { %268 = vst.msk [vmem:[#allocation4 + $0x7] sm:$0x1] %vm42_vm2, %v266_v53 }
  0xb3   :  { %277 = vst.msk [vmem:[#allocation4 + $0x7] sm:$0x1] %vm52_vm3, %v275_v52 }
  0xb8   :  { %v243_v54 = vpop.permute.xlu1 %242 }
  0xb9   :  { %245 = vst.msk [vmem:[#allocation4 + $0x6] sm:$0x1] %vm52_vm3, %v243_v54  ;;  %v211_v55 = vpop.permute.xlu0 %210 }
  0xba   :  { %213 = vst.msk [vmem:[#allocation4 + $0x5] sm:$0x1] %vm52_vm3, %v211_v55 }
  0xbb   :  { %288 = dma.vmem_to_hbm [thread:$0]  %s284_s5, 128, %s286_s7, [#allocation5]  }
  0xbc   :  { %400 = dma.done.wait [#allocation5], 128  }
  0xbd   :  { %401 = vsyncadd [#allocation5], 4294967168 }
  0xbe   :  { %293 = vsyncpa [#allocation5], 1 }

</bundles_post_ra>
